<compile_context>
chip_gen: v6e
topology: v6e:2x2x1
jax: 0.10.0
libtpu: 0.0.40
codegen_flags: <defaults>
</compile_context>

<pallas_src>
import jax
import jax.numpy as jnp
from jax.experimental import pallas as pl
from jax.experimental.pallas import tpu as pltpu

IN_FEATURES = 740 * 2   # 1480
HIDDEN = 20


def sumo_kernel(x_ref, w1_ref, b1_ref, w2_ref, b2_ref, o_ref):
    # The -0.5 input shift is already folded into b1 by the wrapper, so x goes
    # straight to the MXU. bf16 x / w1 with f32 accumulation.
    h = jnp.dot(x_ref[...], w1_ref[...], preferred_element_type=jnp.float32)
    h = jnp.tanh(h + b1_ref[...])
    o_ref[...] = (
        jnp.dot(h, w2_ref[...], preferred_element_type=jnp.float32) + b2_ref[...]
    )


def sumo_forward(state, w1, b1, w2, b2, *, block_b=512):
    """state: (B, 1480) float32; returns (B, nA) float32.

    w1: (1480, HIDDEN), b1: (1, HIDDEN), w2: (HIDDEN, nA), b2: (1, nA)
    (weights are (in, out), i.e. the transpose of nn.Linear's layout).
    """
    B, K = state.shape
    nA = w2.shape[1]
    K_pad = ((K + 127) // 128) * 128  # 1480 -> 1536

    # Exact algebraic fold of the "-0.5" input shift into the first bias:
    # (x - 0.5) @ w1 + b1 == x @ w1 + (b1 - 0.5 * sum(w1, axis=0)).
    b1_eff = (b1 - 0.5 * jnp.sum(w1, axis=0, keepdims=True)).astype(jnp.float32)

    # Zero-pad the K dim (padded w1 rows are zero, so results are unchanged),
    # then cast the large operands to bf16 to halve HBM bytes.
    x = jnp.pad(state, ((0, 0), (0, K_pad - K))).astype(jnp.bfloat16)
    w1p = jnp.pad(w1, ((0, K_pad - K), (0, 0))).astype(jnp.bfloat16)
    w2f = w2.astype(jnp.float32)
    b2f = b2.astype(jnp.float32)

    # Batch tiling: TB is a multiple of 8 (sublane) and capped at block_b
    # (multiple of 256 by default for MXU-row alignment on v6e/v7x while
    # staying well inside v7x's 64 MiB VMEM with double-buffering).
    TB = min(block_b, max(8, ((B + 7) // 8) * 8))
    TB = ((TB + 7) // 8) * 8
    B_pad = ((B + TB - 1) // TB) * TB
    if B_pad != B:
        x = jnp.pad(x, ((0, B_pad - B), (0, 0)))
    grid = (B_pad // TB,)

    flops = 2 * B_pad * (K_pad * HIDDEN + HIDDEN * nA)
    bytes_accessed = (
        B_pad * K_pad * 2          # x (bf16)
        + K_pad * HIDDEN * 2       # w1 (bf16)
        + HIDDEN * 4 + HIDDEN * nA * 4 + nA * 4  # biases + w2 (f32)
        + B_pad * nA * 4           # output (f32)
    )

    out = pl.pallas_call(
        sumo_kernel,
        out_shape=jax.ShapeDtypeStruct((B_pad, nA), jnp.float32),
        grid_spec=pltpu.PrefetchScalarGridSpec(
            num_scalar_prefetch=0,
            grid=grid,
            in_specs=[
                pl.BlockSpec((TB, K_pad), lambda i: (i, 0)),      # streamed x tiles
                pl.BlockSpec((K_pad, HIDDEN), lambda i: (0, 0)),  # resident weights
                pl.BlockSpec((1, HIDDEN), lambda i: (0, 0)),
                pl.BlockSpec((HIDDEN, nA), lambda i: (0, 0)),
                pl.BlockSpec((1, nA), lambda i: (0, 0)),
            ],
            out_specs=pl.BlockSpec((TB, nA), lambda i: (i, 0)),
        ),
        compiler_params=pltpu.CompilerParams(
            dimension_semantics=("parallel",),  # shard batch tiles across v7x's 2 TCs
        ),
        cost_estimate=pl.CostEstimate(
            flops=flops,
            transcendentals=B_pad * HIDDEN,
            bytes_accessed=bytes_accessed,
        ),
    )(x, w1p, b1_eff, w2f, b2f)

    return out[:B] if B_pad != B else out


def init_params(key, nA):
    """Deterministic init mimicking nn.Linear (uniform +/- 1/sqrt(fan_in))."""
    k1, k2, k3, k4 = jax.random.split(key, 4)
    bound1 = 1.0 / jnp.sqrt(jnp.float32(IN_FEATURES))
    bound2 = 1.0 / jnp.sqrt(jnp.float32(HIDDEN))
    w1 = jax.random.uniform(k1, (IN_FEATURES, HIDDEN), jnp.float32, -bound1, bound1)
    b1 = jax.random.uniform(k2, (1, HIDDEN), jnp.float32, -bound1, bound1)
    w2 = jax.random.uniform(k3, (HIDDEN, nA), jnp.float32, -bound2, bound2)
    b2 = jax.random.uniform(k4, (1, nA), jnp.float32, -bound2, bound2)
    return w1, b1, w2, b2


if __name__ == "__main__":
    key = jax.random.PRNGKey(0)
    k_state, k_params = jax.random.split(key)

    batch = 8
    nA = 4

    # Synthetic "state" input in [0, 1] — a 1480-dim observation per example.
    state = jax.random.uniform(k_state, (batch, IN_FEATURES), jnp.float32)
    w1, b1, w2, b2 = init_params(k_params, nA)

    out = jax.block_until_ready(sumo_forward(state, w1, b1, w2, b2))

    # Pure-JAX f32 reference (kernel uses bf16 x/w1 with f32 accumulation, so
    # compare with a correspondingly loosened tolerance).
    ref = jnp.tanh((state - 0.5) @ w1 + b1) @ w2 + b2
    assert out.shape == (batch, nA)
    assert jnp.allclose(out, ref, atol=3e-2, rtol=3e-2), float(jnp.max(jnp.abs(out - ref)))

    print("KERNEL_OK")
</pallas_src>

<mosaic_0001>
module attributes {stable_mosaic.version = 11 : i64} {
  func.func @sumo_kernel(%arg0: i32, %arg1: memref<8x1536xbf16, #tpu.memory_space<vmem>>, %arg2: memref<1536x20xbf16, #tpu.memory_space<vmem>>, %arg3: memref<1x20xf32, #tpu.memory_space<vmem>>, %arg4: memref<20x4xf32, #tpu.memory_space<vmem>>, %arg5: memref<1x4xf32, #tpu.memory_space<vmem>>, %arg6: memref<8x4xf32, #tpu.memory_space<vmem>>) attributes {dimension_semantics = [#tpu.dimension_semantics<parallel>], iteration_bounds = array<i64: 1>, scalar_prefetch = 0 : i64, scratch_operands = 0 : i64, tpu.core_type = #tpu.core_type<tc>, window_params = [{transform_indices = @transform_0, window_bounds = array<i64: 8, 1536>}, {pipeline_mode = #tpu.pipeline_mode<synchronous>, transform_indices = @transform_1, window_bounds = array<i64: 1536, 20>}, {pipeline_mode = #tpu.pipeline_mode<synchronous>, transform_indices = @transform_2, window_bounds = array<i64: 1, 20>}, {pipeline_mode = #tpu.pipeline_mode<synchronous>, transform_indices = @transform_3, window_bounds = array<i64: 20, 4>}, {pipeline_mode = #tpu.pipeline_mode<synchronous>, transform_indices = @transform_4, window_bounds = array<i64: 1, 4>}, {transform_indices = @transform_5, window_bounds = array<i64: 8, 4>}]} {
    %c0 = arith.constant 0 : index
    %c0_0 = arith.constant 0 : index
    %0 = vector.load %arg1[%c0, %c0_0] : memref<8x1536xbf16, #tpu.memory_space<vmem>>, vector<8x1536xbf16>
    %c0_1 = arith.constant 0 : index
    %c0_2 = arith.constant 0 : index
    %1 = vector.load %arg2[%c0_1, %c0_2] : memref<1536x20xbf16, #tpu.memory_space<vmem>>, vector<1536x20xbf16>
    %cst = arith.constant dense<0.000000e+00> : vector<8x20xf32>
    %2 = tpu.matmul %0, %1, %cst {dimension_numbers = #tpu.dot_dimension_numbers<[1], [0], [0], [1], [0, 0, 1, 1], [], []>} : vector<8x1536xbf16>, vector<1536x20xbf16>, vector<8x20xf32> -> vector<8x20xf32>
    %c0_3 = arith.constant 0 : index
    %c0_4 = arith.constant 0 : index
    %3 = vector.load %arg3[%c0_3, %c0_4] : memref<1x20xf32, #tpu.memory_space<vmem>>, vector<1x20xf32>
    %4 = vector.broadcast %3 : vector<1x20xf32> to vector<8x20xf32>
    %5 = arith.addf %2, %4 : vector<8x20xf32>
    %6 = math.tanh %5 : vector<8x20xf32>
    %c0_5 = arith.constant 0 : index
    %c0_6 = arith.constant 0 : index
    %7 = vector.load %arg4[%c0_5, %c0_6] : memref<20x4xf32, #tpu.memory_space<vmem>>, vector<20x4xf32>
    %cst_7 = arith.constant dense<0.000000e+00> : vector<8x4xf32>
    %8 = tpu.matmul %6, %7, %cst_7 {dimension_numbers = #tpu.dot_dimension_numbers<[1], [0], [0], [1], [0, 0, 1, 1], [], []>} : vector<8x20xf32>, vector<20x4xf32>, vector<8x4xf32> -> vector<8x4xf32>
    %c0_8 = arith.constant 0 : index
    %c0_9 = arith.constant 0 : index
    %9 = vector.load %arg5[%c0_8, %c0_9] : memref<1x4xf32, #tpu.memory_space<vmem>>, vector<1x4xf32>
    %10 = vector.broadcast %9 : vector<1x4xf32> to vector<8x4xf32>
    %11 = arith.addf %8, %10 : vector<8x4xf32>
    %c0_10 = arith.constant 0 : index
    %c0_11 = arith.constant 0 : index
    %12 = vector.load %arg6[%c0_10, %c0_11] : memref<8x4xf32, #tpu.memory_space<vmem>>, vector<8x4xf32>
    tpu.vector_store %arg6[%c0_10, %c0_11], %11 {strides = array<i32>} : memref<8x4xf32, #tpu.memory_space<vmem>>, vector<8x4xf32>,
    return
  }
  func.func @transform_0(%arg0: i32) -> (i32, i32) {
    %c0_i32 = arith.constant 0 : i32
    %c0_i32_0 = arith.constant 0 : i32
    return %arg0, %c0_i32 : i32, i32
  }
  func.func @transform_1(%arg0: i32) -> (i32, i32) {
    %c0_i32 = arith.constant 0 : i32
    %c0_i32_0 = arith.constant 0 : i32
    %c0_i32_1 = arith.constant 0 : i32
    return %c0_i32, %c0_i32_0 : i32, i32
  }
  func.func @transform_2(%arg0: i32) -> (i32, i32) {
    %c0_i32 = arith.constant 0 : i32
    %c0_i32_0 = arith.constant 0 : i32
    %c0_i32_1 = arith.constant 0 : i32
    return %c0_i32, %c0_i32_0 : i32, i32
  }
  func.func @transform_3(%arg0: i32) -> (i32, i32) {
    %c0_i32 = arith.constant 0 : i32
    %c0_i32_0 = arith.constant 0 : i32
    %c0_i32_1 = arith.constant 0 : i32
    return %c0_i32, %c0_i32_0 : i32, i32
  }
  func.func @transform_4(%arg0: i32) -> (i32, i32) {
    %c0_i32 = arith.constant 0 : i32
    %c0_i32_0 = arith.constant 0 : i32
    %c0_i32_1 = arith.constant 0 : i32
    return %c0_i32, %c0_i32_0 : i32, i32
  }
  func.func @transform_5(%arg0: i32) -> (i32, i32) {
    %c0_i32 = arith.constant 0 : i32
    %c0_i32_0 = arith.constant 0 : i32
    return %arg0, %c0_i32 : i32, i32
  }
}

</mosaic_0001>

<bundles_post_ra>
// kernel: tpu_custom_call.1
= control target key start
LH: loop header
LB: loop body
LE: loop exit
PB: predicated region body
PF: predicated region fallthrough
CT: control target
= control target key end

     0   :  { %vm1099_vm0 = vcmask 1043456   ;;  %vm1549_vm1 = vmmov 0   ;;  %vm1095_vm2 = vcmask 162816   ;;  %vm1173_vm3 = vcmask 31744   ;;  %s1904_s1 = inlined_call_operand.vmem [shape: bf16[1536,20], index: 1, kind: input, shape index: {}]   ;;  %s1905_s0 = inlined_call_operand.vmem [shape: bf16[8,1536], index: 0, kind: input, shape index: {}]   ;;  %s1906_s3 = inlined_call_operand.vmem [shape: f32[20,4], index: 3, kind: input, shape index: {}]   ;;  %s1907_s2 = inlined_call_operand.vmem [shape: f32[1,20], index: 2, kind: input, shape index: {}]   ;;  %s1908_s4 = inlined_call_operand.vmem [shape: f32[1,4], index: 4, kind: input, shape index: {}]   ;;  %s1909_s5 = inlined_call_operand.vmem [shape: f32[8,4], index: 5, kind: output, shape index: {}]  }
   0x1   :  { %v1438_v0 = vld [vmem:[%s1904_s1 + $0x78] sm:$0xff]   ;;  %v1442_v4 = vld [vmem:[%s1904_s1 + $0x70] sm:$0xff]   ;;  %v1446_v8 = vld [vmem:[%s1904_s1 + $0x68] sm:$0xff]  }
   0x2   :  { %v1439_v1 = vld [vmem:[%s1904_s1 + $0xf8] sm:$0xff]   ;;  %1291 = vmatprep.subr.bf16.mxu0 %v1438_v0  ;;  %v1443_v5 = vld [vmem:[%s1904_s1 + $0xf0] sm:$0xff]   ;;  %v1447_v9 = vld [vmem:[%s1904_s1 + $0xe8] sm:$0xff]  }
   0x3   :  { %v1440_v2 = vld [vmem:[%s1904_s1 + $0x38] sm:$0xff]   ;;  %1313 = vmatprep.subr.bf16.mxu1 %v1439_v1  ;;  %v1444_v6 = vld [vmem:[%s1904_s1 + $0x30] sm:$0xff]   ;;  %v1448_v10 = vld [vmem:[%s1904_s1 + $0x28] sm:$0xff]  }
   0x4   :  { %v1441_v3 = vld [vmem:[%s1904_s1 + $0xb8] sm:$0xff]   ;;  %1292 = vmatpush3.bf16.msra.mxu0 %v1440_v2  ;;  %v1445_v7 = vld [vmem:[%s1904_s1 + $0xb0] sm:$0xff]   ;;  %v1449_v11 = vld [vmem:[%s1904_s1 + $0xa8] sm:$0xff]  }
   0x5   :  { %1314 = vmatpush3.bf16.msra.mxu1 %v1441_v3  ;;  %1293 = vmatprep.subr.bf16.mxu0 %v1442_v4  ;;  %v1450_v12 = vld [vmem:[%s1904_s1 + $0x60] sm:$0xff]   ;;  %v1454_v16 = vld [vmem:[%s1904_s1 + $0x58] sm:$0xff]   ;;  %v1458_v20 = vld [vmem:[%s1904_s1 + $0x50] sm:$0xff]  }
   0x6   :  { %1315 = vmatprep.subr.bf16.mxu1 %v1443_v5  ;;  %v1451_v13 = vld [vmem:[%s1904_s1 + $0xe0] sm:$0xff]   ;;  %v1455_v17 = vld [vmem:[%s1904_s1 + $0xd8] sm:$0xff]   ;;  %v1459_v21 = vld [vmem:[%s1904_s1 + $0xd0] sm:$0xff]  }
   0x7   :  { %v1452_v14 = vld [vmem:[%s1904_s1 + $0x20] sm:$0xff]   ;;  %v1456_v18 = vld [vmem:[%s1904_s1 + $0x18] sm:$0xff]   ;;  %v1460_v22 = vld [vmem:[%s1904_s1 + $0x10] sm:$0xff]  }
   0x8   :  { %1294 = vmatpush3.bf16.msra.mxu0 %v1444_v6  ;;  %v1453_v15 = vld [vmem:[%s1904_s1 + $0xa0] sm:$0xff]   ;;  %v1457_v19 = vld [vmem:[%s1904_s1 + $0x98] sm:$0xff]   ;;  %v1461_v23 = vld [vmem:[%s1904_s1 + $0x90] sm:$0xff]  }
   0x9   :  { %1316 = vmatpush3.bf16.msra.mxu1 %v1445_v7  ;;  %1295 = vmatprep.subr.bf16.mxu0 %v1446_v8  ;;  %v1462_v24 = vld [vmem:[%s1904_s1 + $0x48] sm:$0xff]   ;;  %v1466_v28 = vld [vmem:[%s1904_s1 + $0x40] sm:$0xff]   ;;  %v1474_v38 = vld [vmem:[%s1904_s1 + $0x178] sm:$0xff]  }
   0xa   :  { %1317 = vmatprep.subr.bf16.mxu1 %v1447_v9  ;;  %v1463_v25 = vld [vmem:[%s1904_s1 + $0xc8] sm:$0xff]   ;;  %v1467_v29 = vld [vmem:[%s1904_s1 + $0xc0] sm:$0xff]   ;;  %v1475_v39 = vld [vmem:[%s1904_s1 + $0x1f8] sm:$0xff]  }
   0xb   :  { %v1464_v26 = vld [vmem:[%s1904_s1 + $0x8] sm:$0xff]   ;;  %v1468_v30 = vld [vmem:[%s1904_s1] sm:$0xff]   ;;  %v1476_v40 = vld [vmem:[%s1904_s1 + $0x138] sm:$0xff]  }
   0xc   :  { %1296 = vmatpush3.bf16.msra.mxu0 %v1448_v10  ;;  %v1465_v27 = vld [vmem:[%s1904_s1 + $0x88] sm:$0xff]   ;;  %v1469_v31 = vld [vmem:[%s1904_s1 + $0x80] sm:$0xff]   ;;  %v1477_v41 = vld [vmem:[%s1904_s1 + $0x1b8] sm:$0xff]  }
   0xd   :  { %1318 = vmatpush3.bf16.msra.mxu1 %v1449_v11  ;;  %1297 = vmatprep.subr.bf16.mxu0 %v1450_v12  ;;  %v21_v32 = vld [vmem:[%s1905_s0] sm:$0xff]  ;;  %v22_v33 = vld [vmem:[%s1905_s0 + $0x8] sm:$0xff]  ;;  %v1478_v42 = vld [vmem:[%s1904_s1 + $0x170] sm:$0xff]  }
   0xe   :  { %1319 = vmatprep.subr.bf16.mxu1 %v1451_v13  ;;  %v1180_v34 = vcombine.low %v21_v32, %v21_v32  ;;  %v1181_v35 = vcombine.high %v21_v32, %v21_v32  ;;  %v1182_v36 = vcombine.low %v22_v33, %v22_v33  ;;  %v1183_v37 = vcombine.high %v22_v33, %v22_v33  ;;  %v1479_v43 = vld [vmem:[%s1904_s1 + $0x1f0] sm:$0xff]   ;;  %v1482_v46 = vld [vmem:[%s1904_s1 + $0x168] sm:$0xff]   ;;  %v1486_v50 = vld [vmem:[%s1904_s1 + $0x160] sm:$0xff]  }
   0xf   :  { %v1480_v44 = vld [vmem:[%s1904_s1 + $0x130] sm:$0xff]   ;;  %v1483_v47 = vld [vmem:[%s1904_s1 + $0x1e8] sm:$0xff]   ;;  %v1487_v51 = vld [vmem:[%s1904_s1 + $0x1e0] sm:$0xff]  }
  0x10   :  { %1298 = vmatpush3.bf16.msra.mxu0 %v1452_v14  ;;  %876 = vmatprep.mubr.bf16.mxu0 %v1181_v35  ;;  %v1481_v45 = vld [vmem:[%s1904_s1 + $0x1b0] sm:$0xff]   ;;  %v1484_v48 = vld [vmem:[%s1904_s1 + $0x128] sm:$0xff]   ;;  %v1488_v52 = vld [vmem:[%s1904_s1 + $0x120] sm:$0xff]  }
  0x11   :  { %1320 = vmatpush3.bf16.msra.mxu1 %v1453_v15  ;;  %1299 = vmatprep.subr.bf16.mxu0 %v1454_v16  ;;  %v1485_v49 = vld [vmem:[%s1904_s1 + $0x1a8] sm:$0xff]   ;;  %v1489_v53 = vld [vmem:[%s1904_s1 + $0x1a0] sm:$0xff]   ;;  %v1490_v54 = vld [vmem:[%s1904_s1 + $0x158] sm:$0xff]  }
  0x12   :  { %1321 = vmatprep.subr.bf16.mxu1 %v1455_v17  ;;  %916 = vmatprep.mubr.bf16.mxu1 %v1183_v37  ;;  %v1491_v55 = vld [vmem:[%s1904_s1 + $0x1d8] sm:$0xff]   ;;  %v1494_v58 = vld [vmem:[%s1904_s1 + $0x150] sm:$0xff]   ;;  %v1498_v62 = vld [vmem:[%s1904_s1 + $0x148] sm:$0xff]  }
  0x13   :  { %v1492_v56 = vld [vmem:[%s1904_s1 + $0x118] sm:$0xff]   ;;  %v1495_v59 = vld [vmem:[%s1904_s1 + $0x1d0] sm:$0xff]   ;;  %v1499_v63 = vld [vmem:[%s1904_s1 + $0x1c8] sm:$0xff]  }
  0x14   :  { %1300 = vmatpush3.bf16.msra.mxu0 %v1456_v18  ;;  %v1493_v57 = vld [vmem:[%s1904_s1 + $0x198] sm:$0xff]   ;;  %v1496_v60 = vld [vmem:[%s1904_s1 + $0x110] sm:$0xff]   ;;  %v1500_v0 = vld [vmem:[%s1904_s1 + $0x108] sm:$0xff]  }
  0x15   :  { %1322 = vmatpush3.bf16.msra.mxu1 %v1457_v19  ;;  %1301 = vmatprep.subr.bf16.mxu0 %v1458_v20  ;;  %v1497_v61 = vld [vmem:[%s1904_s1 + $0x190] sm:$0xff]   ;;  %v1501_v1 = vld [vmem:[%s1904_s1 + $0x188] sm:$0xff]   ;;  %v1502_v2 = vld [vmem:[%s1904_s1 + $0x140] sm:$0xff]  }
  0x16   :  { %1323 = vmatprep.subr.bf16.mxu1 %v1459_v21  ;;  %v1503_v3 = vld [vmem:[%s1904_s1 + $0x1c0] sm:$0xff]   ;;  %v23_v6 = vld [vmem:[%s1905_s0 + $0x10] sm:$0xff]  ;;  %v24_v9 = vld [vmem:[%s1905_s0 + $0x18] sm:$0xff] }
  0x17   :  { %v1504_v4 = vld [vmem:[%s1904_s1 + $0x100] sm:$0xff]   ;;  %v1184_v7 = vcombine.low %v23_v6, %v23_v6  ;;  %v1185_v8 = vcombine.high %v23_v6, %v23_v6  ;;  %v1186_v10 = vcombine.low %v24_v9, %v24_v9  ;;  %v1187_v11 = vcombine.high %v24_v9, %v24_v9  ;;  %v1510_v12 = vld [vmem:[%s1904_s1 + $0x278] sm:$0xff]   ;;  %v1514_v16 = vld [vmem:[%s1904_s1 + $0x270] sm:$0xff]  }
  0x18   :  { %1302 = vmatpush3.bf16.msra.mxu0 %v1460_v22  ;;  %v1505_v5 = vld [vmem:[%s1904_s1 + $0x180] sm:$0xff]   ;;  %v1511_v13 = vld [vmem:[%s1904_s1 + $0x2f8] sm:$0xff]   ;;  %v1515_v17 = vld [vmem:[%s1904_s1 + $0x2f0] sm:$0xff]  }
  0x19   :  { %1324 = vmatpush3.bf16.msra.mxu1 %v1461_v23  ;;  %1303 = vmatprep.subr.bf16.mxu0 %v1462_v24  ;;  %v1512_v14 = vld [vmem:[%s1904_s1 + $0x238] sm:$0xff]   ;;  %v1516_v18 = vld [vmem:[%s1904_s1 + $0x230] sm:$0xff]   ;;  %v1518_v20 = vld [vmem:[%s1904_s1 + $0x268] sm:$0xff]  }
  0x1a   :  { %1325 = vmatprep.subr.bf16.mxu1 %v1463_v25  ;;  %v1513_v15 = vld [vmem:[%s1904_s1 + $0x2b8] sm:$0xff]   ;;  %v1517_v19 = vld [vmem:[%s1904_s1 + $0x2b0] sm:$0xff]   ;;  %v1519_v21 = vld [vmem:[%s1904_s1 + $0x2e8] sm:$0xff]  }
  0x1b   :  { %v1520_v22 = vld [vmem:[%s1904_s1 + $0x228] sm:$0xff]   ;;  %v1522_v24 = vld [vmem:[%s1904_s1 + $0x260] sm:$0xff]   ;;  %v1530_v32 = vld [vmem:[%s1904_s1 + $0x250] sm:$0xff]  }
  0x1c   :  { %1304 = vmatpush3.bf16.msra.mxu0 %v1464_v26  ;;  %v1521_v23 = vld [vmem:[%s1904_s1 + $0x2a8] sm:$0xff]   ;;  %v1523_v25 = vld [vmem:[%s1904_s1 + $0x2e0] sm:$0xff]   ;;  %v1531_v33 = vld [vmem:[%s1904_s1 + $0x2d0] sm:$0xff]  }
  0x1d   :  { %1326 = vmatpush3.bf16.msra.mxu1 %v1465_v27  ;;  %1305 = vmatprep.subr.bf16.mxu0 %v1466_v28  ;;  %v1524_v26 = vld [vmem:[%s1904_s1 + $0x220] sm:$0xff]   ;;  %v1526_v28 = vld [vmem:[%s1904_s1 + $0x258] sm:$0xff]   ;;  %v1533_v35 = vld [vmem:[%s1904_s1 + $0x290] sm:$0xff]  }
  0x1e   :  { %1327 = vmatprep.subr.bf16.mxu1 %v1467_v29  ;;  %v1525_v27 = vld [vmem:[%s1904_s1 + $0x2a0] sm:$0xff]   ;;  %v1527_v29 = vld [vmem:[%s1904_s1 + $0x2d8] sm:$0xff]   ;;  %v1535_v37 = vld [vmem:[%s1904_s1 + $0x2c8] sm:$0xff]  }
  0x20   :  { %1306 = vmatpush3.bf16.msra.mxu0 %v1468_v30  ;;  %v1528_v30 = vld [vmem:[%s1904_s1 + $0x218] sm:$0xff]  }
  0x21   :  { %1328 = vmatpush3.bf16.msra.mxu1 %v1469_v31  ;;  %1335 = vmatprep.subr.bf16.mxu0 %v1474_v38  ;;  %v1529_v31 = vld [vmem:[%s1904_s1 + $0x298] sm:$0xff]   ;;  %v1536_v38 = vld [vmem:[%s1904_s1 + $0x208] sm:$0xff]  }
  0x22   :  { %1357 = vmatprep.subr.bf16.mxu1 %v1475_v39  ;;  %v1537_v39 = vld [vmem:[%s1904_s1 + $0x288] sm:$0xff]  }
  0x23   :  { %877 = vmatmul.mubr.bf16.vlgmr.msra.gmra.mxu0 %v1180_v34  ;;  %v1532_v34 = vld [vmem:[%s1904_s1 + $0x210] sm:$0xff]  }
  0x24   :  { %917 = vmatmul.mubr.bf16.vlgmr.msra.gmra.mxu1 %v1182_v36  ;;  %1336 = vmatpush3.bf16.msra.mxu0 %v1476_v40  ;;  %v1534_v36 = vld [vmem:[%s1904_s1 + $0x248] sm:$0xff]   ;;  %v1538_v40 = vld [vmem:[%s1904_s1 + $0x240] sm:$0xff]  }
  0x25   :  { %1358 = vmatpush3.bf16.msra.mxu1 %v1477_v41  ;;  %1337 = vmatprep.subr.bf16.mxu0 %v1478_v42  ;;  %v1539_v41 = vld [vmem:[%s1904_s1 + $0x2c0] sm:$0xff]  }
  0x26   :  { %1359 = vmatprep.subr.bf16.mxu1 %v1479_v43  ;;  %956 = vmatprep.mubr.bf16.mxu0 %v1185_v8  ;;  %v1540_v42 = vld [vmem:[%s1904_s1 + $0x200] sm:$0xff]  }
  0x27   :  { %996 = vmatprep.mubr.bf16.mxu1 %v1187_v11  ;;  %v1541_v43 = vld [vmem:[%s1904_s1 + $0x280] sm:$0xff]  }
  0x28   :  { %1338 = vmatpush3.bf16.msra.mxu0 %v1480_v44  ;;  %v25_v44 = vld [vmem:[%s1905_s0 + $0x20] sm:$0xff] }
  0x29   :  { %1360 = vmatpush3.bf16.msra.mxu1 %v1481_v45  ;;  %1339 = vmatprep.subr.bf16.mxu0 %v1482_v46  ;;  %v26_v45 = vld [vmem:[%s1905_s0 + $0x28] sm:$0xff]  ;;  %v1188_v46 = vcombine.low %v25_v44, %v25_v44 }
  0x2a   :  { %1361 = vmatprep.subr.bf16.mxu1 %v1483_v47  ;;  %v1189_v47 = vcombine.high %v25_v44, %v25_v44 }
  0x2c   :  { %1340 = vmatpush3.bf16.msra.mxu0 %v1484_v48  ;;  %v1190_v48 = vcombine.low %v26_v45, %v26_v45 }
  0x2d   :  { %1362 = vmatpush3.bf16.msra.mxu1 %v1485_v49  ;;  %1341 = vmatprep.subr.bf16.mxu0 %v1486_v50  ;;  %v1191_v49 = vcombine.high %v26_v45, %v26_v45  ;;  %v1548_v50 = vmov 0.0  }
  0x2e   :  { %1363 = vmatprep.subr.bf16.mxu1 %v1487_v51  ;;  %v1087_v51 = vld [vmem:[%s1906_s3 + $0x10] sm:$0xf] }
  0x30   :  { %1342 = vmatpush3.bf16.msra.mxu0 %v1488_v52  ;;  %v1086_v52 = vld [vmem:[%s1906_s3 + $0x8] sm:$0xff] }
  0x31   :  { %1364 = vmatpush3.bf16.msra.mxu1 %v1489_v53  ;;  %1343 = vmatprep.subr.bf16.mxu0 %v1490_v54  ;;  %v1085_v53 = vld [vmem:[%s1906_s3] sm:$0xff] }
  0x32   :  { %1365 = vmatprep.subr.bf16.mxu1 %v1491_v55 }
  0x34   :  { %1344 = vmatpush3.bf16.msra.mxu0 %v1492_v56 }
  0x35   :  { %1366 = vmatpush3.bf16.msra.mxu1 %v1493_v57  ;;  %1345 = vmatprep.subr.bf16.mxu0 %v1494_v58 }
  0x36   :  { %1367 = vmatprep.subr.bf16.mxu1 %v1495_v59 }
  0x38   :  { %1346 = vmatpush3.bf16.msra.mxu0 %v1496_v60 }
  0x39   :  { %1368 = vmatpush3.bf16.msra.mxu1 %v1497_v61  ;;  %1347 = vmatprep.subr.bf16.mxu0 %v1498_v62 }
  0x3a   :  { %1369 = vmatprep.subr.bf16.mxu1 %v1499_v63 }
  0x3c   :  { %1348 = vmatpush3.bf16.msra.mxu0 %v1500_v0 }
  0x3d   :  { %1370 = vmatpush3.bf16.msra.mxu1 %v1501_v1  ;;  %1349 = vmatprep.subr.bf16.mxu0 %v1502_v2 }
  0x3e   :  { %1371 = vmatprep.subr.bf16.mxu1 %v1503_v3 }
  0x40   :  { %1350 = vmatpush3.bf16.msra.mxu0 %v1504_v4 }
  0x41   :  { %1372 = vmatpush3.bf16.msra.mxu1 %v1505_v5  ;;  %1379 = vmatprep.subr.bf16.mxu0 %v1510_v12 }
  0x42   :  { %1401 = vmatprep.subr.bf16.mxu1 %v1511_v13 }
  0x43   :  { %957 = vmatmul.mubr.bf16.vlgmr.msra.gmra.mxu0 %v1184_v7  ;;  %v1179_v7 = vld [vmem:[%s1907_s2] ss:$0 sm:$0xff] }
  0x44   :  { %997 = vmatmul.mubr.bf16.vlgmr.msra.gmra.mxu1 %v1186_v10  ;;  %1380 = vmatpush3.bf16.msra.mxu0 %v1512_v14 }
  0x45   :  { %1402 = vmatpush3.bf16.msra.mxu1 %v1513_v15  ;;  %1381 = vmatprep.subr.bf16.mxu0 %v1514_v16 }
  0x46   :  { %1403 = vmatprep.subr.bf16.mxu1 %v1515_v17  ;;  %1036 = vmatprep.mubr.bf16.mxu0 %v1189_v47 }
  0x47   :  { %1076 = vmatprep.mubr.bf16.mxu1 %v1191_v49 }
  0x48   :  { %1382 = vmatpush3.bf16.msra.mxu0 %v1516_v18 }
  0x49   :  { %1404 = vmatpush3.bf16.msra.mxu1 %v1517_v19  ;;  %1383 = vmatprep.subr.bf16.mxu0 %v1518_v20 }
  0x4a   :  { %1405 = vmatprep.subr.bf16.mxu1 %v1519_v21 }
  0x4c   :  { %1384 = vmatpush3.bf16.msra.mxu0 %v1520_v22 }
  0x4d   :  { %1406 = vmatpush3.bf16.msra.mxu1 %v1521_v23  ;;  %1385 = vmatprep.subr.bf16.mxu0 %v1522_v24 }
  0x4e   :  { %1407 = vmatprep.subr.bf16.mxu1 %v1523_v25 }
  0x50   :  { %1386 = vmatpush3.bf16.msra.mxu0 %v1524_v26 }
  0x51   :  { %1408 = vmatpush3.bf16.msra.mxu1 %v1525_v27  ;;  %1387 = vmatprep.subr.bf16.mxu0 %v1526_v28  ;;  %v1288_v28 = vld [vmem:[%s1908_s4] ss:$0 sm:$0xff] }
  0x52   :  { %1409 = vmatprep.subr.bf16.mxu1 %v1527_v29 }
  0x54   :  { %1388 = vmatpush3.bf16.msra.mxu0 %v1528_v30 }
  0x55   :  { %1410 = vmatpush3.bf16.msra.mxu1 %v1529_v31  ;;  %1389 = vmatprep.subr.bf16.mxu0 %v1530_v32 }
  0x56   :  { %1411 = vmatprep.subr.bf16.mxu1 %v1531_v33 }
  0x58   :  { %1390 = vmatpush3.bf16.msra.mxu0 %v1532_v34 }
  0x59   :  { %1412 = vmatpush3.bf16.msra.mxu1 %v1533_v35  ;;  %1391 = vmatprep.subr.bf16.mxu0 %v1534_v36 }
  0x5a   :  { %1413 = vmatprep.subr.bf16.mxu1 %v1535_v37 }
  0x5c   :  { %1392 = vmatpush3.bf16.msra.mxu0 %v1536_v38 }
  0x5d   :  { %1414 = vmatpush3.bf16.msra.mxu1 %v1537_v39  ;;  %1393 = vmatprep.subr.bf16.mxu0 %v1538_v40 }
  0x5e   :  { %1415 = vmatprep.subr.bf16.mxu1 %v1539_v41 }
  0x60   :  { %1394 = vmatpush3.bf16.msra.mxu0 %v1540_v42 }
  0x61   :  { %1416 = vmatpush3.bf16.msra.mxu1 %v1541_v43  ;;  %1427 = vmatprep.subr.mxu0 %v1548_v50 }
  0x63   :  { %1037 = vmatmul.mubr.bf16.vlgmr.msra.gmra.mxu0 %v1188_v46 }
  0x64   :  { %1077 = vmatmul.mubr.bf16.vlgmr.msra.gmra.mxu1 %v1190_v48  ;;  %1433 = vmatprep.mubr.msk.f32.mxu0 %vm1549_vm1, %v1548_v50 }
  0x65   :  { %1428 = vmatpush3.msk.msra.mxu0 %vm1099_vm0, %v1087_v51 }
  0x66   :  { %1429 = vmatprep.subr.mxu0 %v1548_v50 }
  0x67   :  { %1430 = vmatpush3.msra.mxu0 %v1086_v52 }
  0x68   :  { %1431 = vmatprep.subr.mxu0 %v1548_v50 }
  0x69   :  { %1432 = vmatpush3.msra.mxu0 %v1085_v53 }
  0xe3   :  { %v1307_v54 = vpop.f32.mrf.mxu0 }
  0xe4   :  { %v1329_v55 = vpop.f32.mrf.mxu1 }
  0xe5   :  { %v1308_v56 = vpop.f32.mrf.mxu0 }
  0xe6   :  { %v1330_v57 = vpop.f32.mrf.mxu1  ;;  %v1309_v6 = vadd.f32 %v1308_v56, %v1307_v54 }
  0xe7   :  { %v1310_v58 = vpop.f32.mrf.mxu0  ;;  %v1331_v9 = vadd.f32 %v1330_v57, %v1329_v55 }
  0xe8   :  { %v1332_v59 = vpop.f32.mrf.mxu1  ;;  %v879_v8 = vadd.f32 %v1309_v6, %v1179_v7 }
  0xe9   :  { %v1311_v60 = vpop.f32.mrf.mxu0 }
  0xea   :  { %v1333_v61 = vpop.f32.mrf.mxu1  ;;  %v919_v11 = vadd.f32 %v1331_v9, %v879_v8 }
 0x103   :  { %v1351_v62 = vpop.f32.mrf.mxu0 }
 0x104   :  { %v1373_v63 = vpop.f32.mrf.mxu1 }
 0x105   :  { %v1352_v0 = vpop.f32.mrf.mxu0 }
 0x106   :  { %v1374_v1 = vpop.f32.mrf.mxu1  ;;  %v1353_v10 = vadd.f32 %v1352_v0, %v1351_v62 }
 0x107   :  { %v1354_v2 = vpop.f32.mrf.mxu0  ;;  %v1375_v13 = vadd.f32 %v1374_v1, %v1373_v63 }
 0x108   :  { %v1376_v3 = vpop.f32.mrf.mxu1  ;;  %v959_v12 = vadd.f32 %v1353_v10, %v919_v11 }
 0x109   :  { %v1355_v4 = vpop.f32.mrf.mxu0 }
 0x10a   :  { %v1377_v5 = vpop.f32.mrf.mxu1  ;;  %v999_v17 = vadd.f32 %v1375_v13, %v959_v12 }
 0x123   :  { %v1395_v14 = vpop.f32.mrf.mxu0 }
 0x124   :  { %v1417_v15 = vpop.f32.mrf.mxu1 }
 0x125   :  { %v1396_v16 = vpop.f32.mrf.mxu0 }
 0x126   :  { %v1397_v18 = vadd.f32 %v1396_v16, %v1395_v14  ;;  %v1418_v19 = vpop.f32.mrf.mxu1 }
 0x127   :  { %v1398_v20 = vpop.f32.mrf.mxu0  ;;  %v1419_v22 = vadd.f32 %v1418_v19, %v1417_v15 }
 0x128   :  { %v1039_v21 = vadd.f32 %v1397_v18, %v999_v17  ;;  %v1420_v23 = vpop.f32.mrf.mxu1 }
 0x129   :  { %v1399_v24 = vpop.f32.mrf.mxu0 }
 0x12a   :  { %v1079_v25 = vadd.f32 %v1419_v22, %v1039_v21  ;;  %v1421_v26 = vpop.f32.mrf.mxu1 }
 0x12c   :  { %1546 = vtanh.f32 %v1079_v25 }
 0x139   :  { %v1547_v27 = vpop.eup %1546 }
 0x13a   :  { %1434 = vmatmul.mubr.msk.f32.vlgmr.msra.gmra.mxu0 %vm1095_vm2, %v1547_v27 }
 0x1fa   :  { %v1169_v29 = vpop.f32.mrf.mxu0 }
 0x1fb   :  { %v1170_v30 = vadd.f32 %v1288_v28, %v1169_v29 }
 0x1fc   :  { %v1435_v31 = vpop.f32.mrf.mxu0 }
 0x1fd   :  { %1174 = vst.msk [vmem:[%s1909_s5] sm:$0xff] %vm1173_vm3, %v1170_v30 }

</bundles_post_ra>
